<compile_context>
chip_gen: v5e
topology: v5e:2x2
jax: 0.10.0
libtpu: 0.0.40
codegen_flags: <defaults>
</compile_context>

<pallas_src>
import functools

import jax
import jax.numpy as jnp
from jax import lax
from jax.experimental import pallas as pl
from jax.experimental.pallas import tpu as pltpu


# --------------------------------------------------------------------------
# Encoder kernel: LSTM(F -> H) + Linear mu + Linear sigma + reparameterize
# --------------------------------------------------------------------------
def _encoder_kernel(x_ref, noise_ref, wih_ref, whh_ref, b_ref,
                    wmu_ref, bmu_ref, wsig_ref, bsig_ref,
                    z_ref, rf_ref, *, seq_len, batch_pad, hidden_dim):
    """x_ref: (T*Bp, Fin)  noise_ref: (T*Bp, E)
    wih: (Fin, 4H)  whh: (H, 4H)  b: (1, 4H)
    wmu/wsig: (H, E)  bmu/bsig: (1, E)
    z_ref: (T*Bp, E)   rf_ref: (T*Bp, H)    (time-major, padded batch)
    """
    T, Bp, H = seq_len, batch_pad, hidden_dim

    whh = whh_ref[...]
    # (1) hoisted input projection for all timesteps: one big matmul
    xw = jnp.dot(x_ref[...], wih_ref[...],
                 preferred_element_type=jnp.float32) + b_ref[...]   # (T*Bp, 4H)

    # (3) state kept as values (vregs), zero-initialized like torch h_0/c_0
    h = jnp.zeros((Bp, H), jnp.float32)
    c = jnp.zeros((Bp, H), jnp.float32)

    hs = []
    for t in range(T):                                   # (6) fully unrolled
        g = xw[t * Bp:(t + 1) * Bp, :] + jnp.dot(
            h, whh, preferred_element_type=jnp.float32)  # (Bp, 4H)
        i = jax.nn.sigmoid(g[:, 0 * H:1 * H])
        f = jax.nn.sigmoid(g[:, 1 * H:2 * H])
        gg = jnp.tanh(g[:, 2 * H:3 * H])
        o = jax.nn.sigmoid(g[:, 3 * H:4 * H])
        c = f * c + i * gg
        h = o * jnp.tanh(c)
        hs.append(h)

    rf = jnp.concatenate(hs, axis=0)                     # (4) single store
    rf_ref[...] = rf

    # fused Linear mu / sigma + reparameterization
    mu = jnp.dot(rf, wmu_ref[...], preferred_element_type=jnp.float32) + bmu_ref[...]
    sg = jnp.dot(rf, wsig_ref[...], preferred_element_type=jnp.float32) + bsig_ref[...]
    z_ref[...] = noise_ref[...] * sg + mu


# --------------------------------------------------------------------------
# Decoder kernel: 2-layer LSTM (E -> H -> Fp), Fp = padded n_features
# --------------------------------------------------------------------------
def _decoder_kernel(z_ref, wih1_ref, whh1_ref, b1_ref, w2_ref, b2_ref,
                    out_ref, *, seq_len, batch_pad, hidden_dim, feat_pad):
    """z_ref: (T*Bp, E)
    wih1: (E, 4H)  whh1: (H, 4H)  b1: (1, 4H)
    w2:  (H+Fp, 4Fp) = concat([Wih2; Whh2]) zero-padded   b2: (1, 4Fp)
    out_ref: (T*Bp, Fp)
    """
    T, Bp, H, Fp = seq_len, batch_pad, hidden_dim, feat_pad

    whh1 = whh1_ref[...]
    w2 = w2_ref[...]
    b2 = b2_ref[...]

    # (1) layer-1 input projection hoisted out of the recurrence
    xw1 = jnp.dot(z_ref[...], wih1_ref[...],
                  preferred_element_type=jnp.float32) + b1_ref[...]  # (T*Bp, 4H)

    # (3) all LSTM state carried in vregs
    h1 = jnp.zeros((Bp, H), jnp.float32)
    c1 = jnp.zeros((Bp, H), jnp.float32)
    h2 = jnp.zeros((Bp, Fp), jnp.float32)
    c2 = jnp.zeros((Bp, Fp), jnp.float32)

    outs = []
    for t in range(T):                                   # (6) fully unrolled
        # ---- LSTM layer 1 ----
        g1 = xw1[t * Bp:(t + 1) * Bp, :] + jnp.dot(
            h1, whh1, preferred_element_type=jnp.float32)
        i1 = jax.nn.sigmoid(g1[:, 0 * H:1 * H])
        f1 = jax.nn.sigmoid(g1[:, 1 * H:2 * H])
        gg1 = jnp.tanh(g1[:, 2 * H:3 * H])
        o1 = jax.nn.sigmoid(g1[:, 3 * H:4 * H])
        c1 = f1 * c1 + i1 * gg1
        h1 = o1 * jnp.tanh(c1)

        # ---- LSTM layer 2, (2) fused single dot over concat([h1, h2]) ----
        hcat = jnp.concatenate([h1, h2], axis=1)         # (Bp, H+Fp)
        g2 = jnp.dot(hcat, w2, preferred_element_type=jnp.float32) + b2  # (Bp, 4Fp)
        i2 = jax.nn.sigmoid(g2[:, 0 * Fp:1 * Fp])
        f2 = jax.nn.sigmoid(g2[:, 1 * Fp:2 * Fp])
        gg2 = jnp.tanh(g2[:, 2 * Fp:3 * Fp])
        o2 = jax.nn.sigmoid(g2[:, 3 * Fp:4 * Fp])
        c2 = f2 * c2 + i2 * gg2
        h2 = o2 * jnp.tanh(c2)
        outs.append(h2)

    out_ref[...] = jnp.concatenate(outs, axis=0)         # (4) single store


# --------------------------------------------------------------------------
# Loss kernel: MSE + (faithful) KL of the original module
# --------------------------------------------------------------------------
def _loss_kernel(dec_ref, x_ref, lv_ref, recon_ref, kld_ref, *, batch):
    """dec_ref/x_ref: (B*T, F)   lv_ref (mu == log_var == rf): (B*T, H)
    recon_ref: (1,1)   kld_ref: (1,H)  [= torch kld_loss vector]"""
    d = dec_ref[...] - x_ref[...]
    n = d.shape[0] * d.shape[1]
    ss = jnp.sum(d * d, axis=1, keepdims=True)                 # (B*T, 1)
    recon_ref[...] = jnp.sum(ss, axis=0, keepdims=True) * (1.0 / n)

    lv = lv_ref[...]
    term = 1.0 + lv - lv * lv - jnp.exp(lv)
    # mean_b( -0.5 * sum_t(term) ) == (-0.5 / B) * sum_{b,t}(term)
    kld_ref[...] = (-0.5 / batch) * jnp.sum(term, axis=0, keepdims=True)


# --------------------------------------------------------------------------
# Parameter init (shapes match nn.LSTM / nn.Linear of the PyTorch module)
# --------------------------------------------------------------------------
def init_vae_params(key, embedding_dim=16, n_features=1):
    E = embedding_dim
    H = 2 * E
    F = n_features
    ks = jax.random.split(key, 16)
    sH = 1.0 / float(jnp.sqrt(H))
    sF = 1.0 / float(jnp.sqrt(max(F, 1)))

    def u(k, shape, s):
        return jax.random.uniform(k, shape, jnp.float32, -s, s)

    return {
        # Encoder lstm1 : F -> H          (torch layout: W (4H, in))
        "enc_w_ih": u(ks[0], (4 * H, F), sH),
        "enc_w_hh": u(ks[1], (4 * H, H), sH),
        "enc_b_ih": u(ks[2], (4 * H,), sH),
        "enc_b_hh": u(ks[3], (4 * H,), sH),
        # Encoder embed_2_mu / embed_2_sigma : Linear(H -> E)
        "mu_w": u(ks[4], (E, H), sH), "mu_b": u(ks[5], (E,), sH),
        "sig_w": u(ks[6], (E, H), sH), "sig_b": u(ks[7], (E,), sH),
        # Decoder lstm1 : E -> H
        "dec1_w_ih": u(ks[8], (4 * H, E), sH),
        "dec1_w_hh": u(ks[9], (4 * H, H), sH),
        "dec1_b_ih": u(ks[10], (4 * H,), sH),
        "dec1_b_hh": u(ks[11], (4 * H,), sH),
        # Decoder lstm2 : H -> F
        "dec2_w_ih": u(ks[12], (4 * F, H), sF),
        "dec2_w_hh": u(ks[13], (4 * F, F), sF),
        "dec2_b_ih": u(ks[14], (4 * F,), sF),
        "dec2_b_hh": u(ks[15], (4 * F,), sF),
    }


# --------------------------------------------------------------------------
# Wrapper: full VAE forward
# --------------------------------------------------------------------------
def vae_forward(params, x, noise, embedding_dim=16, n_features=1):
    """x: (B, T, n_features), noise: (B, T, embedding_dim)  ->
    (m_loss (2E,), dec_output (B,T,F), (recon_loss scalar, KLD (2E,)))"""
    f32 = jnp.float32
    B, T, F = x.shape
    E = embedding_dim
    H = 2 * E
    assert F == n_features

    Bp = ((B + 7) // 8) * 8          # (5) pad batch to f32 sublane width
    Fp = max(8, n_features)          # (5/7) pad decoder layer-2 hidden to 8 lanes
    Fin = max(8, n_features)         # pad encoder input width (avoid K=1 matmul)

    # ---- pad + time-major flatten: (B,T,D) -> (T*Bp, Dpad), zero padded ----
    def to_tm2d(a, pad_to=None):
        Bx, Tx, D = a.shape
        Dp = D if pad_to is None else pad_to
        ap = jnp.zeros((Bp, Tx, Dp), f32).at[:Bx, :, :D].set(a.astype(f32))
        return jnp.transpose(ap, (1, 0, 2)).reshape(Tx * Bp, Dp)

    def from_tm2d(a2d, D):           # (T*Bp, D) -> (B, T, D)
        return jnp.transpose(a2d.reshape(T, Bp, D), (1, 0, 2))[:B]

    x2d = to_tm2d(x, pad_to=Fin)                 # (T*Bp, Fin)
    noise2d = to_tm2d(noise)                     # (T*Bp, E)

    # ---- encoder weight prep (pre-transposed, biases folded) ----
    wih_e = jnp.zeros((Fin, 4 * H), f32).at[:F, :].set(params["enc_w_ih"].T)
    whh_e = params["enc_w_hh"].T                                    # (H, 4H)
    b_e = (params["enc_b_ih"] + params["enc_b_hh"])[None, :]        # (1, 4H)
    wmu = params["mu_w"].T                                          # (H, E)
    bmu = params["mu_b"][None, :]
    wsig = params["sig_w"].T
    bsig = params["sig_b"][None, :]

    # ---- decoder weight prep ----
    wih1_d = params["dec1_w_ih"].T                                  # (E, 4H)
    whh1_d = params["dec1_w_hh"].T                                  # (H, 4H)
    b1_d = (params["dec1_b_ih"] + params["dec1_b_hh"])[None, :]     # (1, 4H)

    # layer-2: fuse [Wih2; Whh2] and zero-pad F -> Fp lanes per gate
    wih2T = params["dec2_w_ih"].T                                   # (H, 4F)
    whh2T = params["dec2_w_hh"].T                                   # (F, 4F)
    b2sum = params["dec2_b_ih"] + params["dec2_b_hh"]               # (4F,)
    w2 = jnp.zeros((H + Fp, 4 * Fp), f32)
    b2 = jnp.zeros((1, 4 * Fp), f32)
    for k in range(4):
        w2 = w2.at[:H, k * Fp:k * Fp + F].set(wih2T[:, k * F:(k + 1) * F])
        w2 = w2.at[H:H + F, k * Fp:k * Fp + F].set(whh2T[:, k * F:(k + 1) * F])
        b2 = b2.at[0, k * Fp:k * Fp + F].set(b2sum[k * F:(k + 1) * F])

    vmem = pl.BlockSpec(memory_space=pltpu.MemorySpace.VMEM)

    # ---- encoder ----
    enc_kernel = functools.partial(
        _encoder_kernel, seq_len=T, batch_pad=Bp, hidden_dim=H)
    z2d, rf2d = pl.pallas_call(
        enc_kernel,
        out_shape=(jax.ShapeDtypeStruct((T * Bp, E), f32),
                   jax.ShapeDtypeStruct((T * Bp, H), f32)),
        in_specs=[vmem] * 9,
        out_specs=(vmem, vmem),
    )(x2d, noise2d, wih_e, whh_e, b_e, wmu, bmu, wsig, bsig)

    # ---- decoder (z stays in padded time-major 2D layout) ----
    dec_kernel = functools.partial(
        _decoder_kernel, seq_len=T, batch_pad=Bp, hidden_dim=H, feat_pad=Fp)
    out2d = pl.pallas_call(
        dec_kernel,
        out_shape=jax.ShapeDtypeStruct((T * Bp, Fp), f32),
        in_specs=[vmem] * 6,
        out_specs=vmem,
    )(z2d, wih1_d, whh1_d, b1_d, w2, b2)

    # ---- un-pad / reshape back to torch layouts ----
    rf_enc = from_tm2d(rf2d, H)                      # (B, T, H)  mu == sigma
    dec_out = from_tm2d(out2d, Fp)[:, :, :F]         # (B, T, F)

    # ---- loss kernel ----
    loss_kernel = functools.partial(_loss_kernel, batch=B)
    recon, kld = pl.pallas_call(
        loss_kernel,
        out_shape=(jax.ShapeDtypeStruct((1, 1), f32),
                   jax.ShapeDtypeStruct((1, H), f32)),
        in_specs=[vmem] * 3,
        out_specs=(vmem, vmem),
    )(dec_out.reshape(B * T, F), x.astype(f32).reshape(B * T, F),
      rf_enc.reshape(B * T, H))

    recon_loss = recon[0, 0]
    kld_loss = kld[0]                                # (H,), as in torch
    kld_weight = 0.00025
    m_loss = recon_loss + kld_weight * kld_loss      # broadcasts to (H,) like torch
    return m_loss, dec_out, (recon_loss, -kld_loss)


# --------------------------------------------------------------------------
# Pure-JAX reference (for correctness check)
# --------------------------------------------------------------------------
def _lstm_scan(x_tm, wih, whh, b, H):
    B = x_tm.shape[1]

    def step(carry, x_t):
        h, c = carry
        g = x_t @ wih + h @ whh + b
        i = jax.nn.sigmoid(g[:, 0 * H:1 * H])
        f = jax.nn.sigmoid(g[:, 1 * H:2 * H])
        gg = jnp.tanh(g[:, 2 * H:3 * H])
        o = jax.nn.sigmoid(g[:, 3 * H:4 * H])
        c = f * c + i * gg
        h = o * jnp.tanh(c)
        return (h, c), h

    init = (jnp.zeros((B, H), jnp.float32), jnp.zeros((B, H), jnp.float32))
    _, ys = lax.scan(step, init, x_tm)
    return ys


def vae_reference(params, x, noise, embedding_dim=16, n_features=1):
    E = embedding_dim
    H = 2 * E
    F = n_features
    x = x.astype(jnp.float32)
    x_tm = jnp.transpose(x, (1, 0, 2))
    rf_tm = _lstm_scan(x_tm, params["enc_w_ih"].T, params["enc_w_hh"].T,
                       (params["enc_b_ih"] + params["enc_b_hh"])[None, :], H)
    rf = jnp.transpose(rf_tm, (1, 0, 2))                        # (B, T, H)
    mu_out = rf @ params["mu_w"].T + params["mu_b"]
    sig_out = rf @ params["sig_w"].T + params["sig_b"]
    z = noise * sig_out + mu_out                                # (B, T, E)
    z_tm = jnp.transpose(z, (1, 0, 2))
    h1_tm = _lstm_scan(z_tm, params["dec1_w_ih"].T, params["dec1_w_hh"].T,
                       (params["dec1_b_ih"] + params["dec1_b_hh"])[None, :], H)
    h2_tm = _lstm_scan(h1_tm, params["dec2_w_ih"].T, params["dec2_w_hh"].T,
                       (params["dec2_b_ih"] + params["dec2_b_hh"])[None, :], F)
    dec_out = jnp.transpose(h2_tm, (1, 0, 2))                   # (B, T, F)

    recon = jnp.mean((dec_out - x) ** 2)
    lv = rf
    kld = jnp.mean(-0.5 * jnp.sum(1.0 + lv - lv * lv - jnp.exp(lv), axis=1), axis=0)
    m_loss = recon + 0.00025 * kld
    return m_loss, dec_out, (recon, -kld)


if __name__ == "__main__":
    EMBEDDING_DIM = 16
    N_FEATURES = 1
    B, T = 2, 8

    key = jax.random.PRNGKey(0)
    k_params, k_x, k_noise = jax.random.split(key, 3)
    params = init_vae_params(k_params, EMBEDDING_DIM, N_FEATURES)
    x = jax.random.normal(k_x, (B, T, N_FEATURES), dtype=jnp.float32)
    noise = jax.random.normal(k_noise, (B, T, EMBEDDING_DIM), dtype=jnp.float32)

    m_loss, dec_out, (recon_loss, kld) = vae_forward(
        params, x, noise, EMBEDDING_DIM, N_FEATURES)
    m_loss = jax.block_until_ready(m_loss)
    dec_out = jax.block_until_ready(dec_out)

    assert dec_out.shape == (B, T, N_FEATURES)
    assert m_loss.shape == (2 * EMBEDDING_DIM,)
    assert kld.shape == (2 * EMBEDDING_DIM,)

    m_ref, dec_ref, (rec_ref, kld_ref) = vae_reference(
        params, x, noise, EMBEDDING_DIM, N_FEATURES)
    err = max(float(jnp.max(jnp.abs(dec_out - dec_ref))),
              float(jnp.max(jnp.abs(m_loss - m_ref))),
              float(jnp.abs(recon_loss - rec_ref)),
              float(jnp.max(jnp.abs(kld - kld_ref))))
    assert err < 1e-4, f"mismatch vs reference: {err}"

    print("KERNEL_OK")
</pallas_src>

<mosaic_0001>
module attributes {stable_mosaic.version = 11 : i64} {
  func.func @_encoder_kernel(%arg0: memref<64x8xf32, #tpu.memory_space<vmem>>, %arg1: memref<64x16xf32, #tpu.memory_space<vmem>>, %arg2: memref<8x128xf32, #tpu.memory_space<vmem>>, %arg3: memref<32x128xf32, #tpu.memory_space<vmem>>, %arg4: memref<1x128xf32, #tpu.memory_space<vmem>>, %arg5: memref<32x16xf32, #tpu.memory_space<vmem>>, %arg6: memref<1x16xf32, #tpu.memory_space<vmem>>, %arg7: memref<32x16xf32, #tpu.memory_space<vmem>>, %arg8: memref<1x16xf32, #tpu.memory_space<vmem>>, %arg9: memref<64x16xf32, #tpu.memory_space<vmem>>, %arg10: memref<64x32xf32, #tpu.memory_space<vmem>>) attributes {dimension_semantics = [], scalar_prefetch = 0 : i64, scratch_operands = 0 : i64, tpu.core_type = #tpu.core_type<tc>} {
    %c0 = arith.constant 0 : index
    %c0_0 = arith.constant 0 : index
    %0 = vector.load %arg3[%c0, %c0_0] : memref<32x128xf32, #tpu.memory_space<vmem>>, vector<32x128xf32>
    %c0_1 = arith.constant 0 : index
    %c0_2 = arith.constant 0 : index
    %1 = vector.load %arg0[%c0_1, %c0_2] : memref<64x8xf32, #tpu.memory_space<vmem>>, vector<64x8xf32>
    %c0_3 = arith.constant 0 : index
    %c0_4 = arith.constant 0 : index
    %2 = vector.load %arg2[%c0_3, %c0_4] : memref<8x128xf32, #tpu.memory_space<vmem>>, vector<8x128xf32>
    %cst = arith.constant dense<0.000000e+00> : vector<64x128xf32>
    %3 = tpu.matmul %1, %2, %cst {dimension_numbers = #tpu.dot_dimension_numbers<[1], [0], [0], [1], [0, 0, 1, 1], [], []>} : vector<64x8xf32>, vector<8x128xf32>, vector<64x128xf32> -> vector<64x128xf32>
    %c0_5 = arith.constant 0 : index
    %c0_6 = arith.constant 0 : index
    %4 = vector.load %arg4[%c0_5, %c0_6] : memref<1x128xf32, #tpu.memory_space<vmem>>, vector<1x128xf32>
    %5 = vector.broadcast %4 : vector<1x128xf32> to vector<64x128xf32>
    %6 = arith.addf %3, %5 : vector<64x128xf32>
    %cst_7 = arith.constant 0.000000e+00 : f32
    %7 = vector.broadcast %cst_7 : f32 to vector<8x32xf32>
    %cst_8 = arith.constant 0.000000e+00 : f32
    %8 = vector.broadcast %cst_8 : f32 to vector<8x32xf32>
    %9 = vector.extract_strided_slice %6 {offsets = [0, 0], sizes = [8, 128], strides = [1, 1]} : vector<64x128xf32> to vector<8x128xf32>
    %cst_9 = arith.constant dense<0.000000e+00> : vector<8x128xf32>
    %10 = tpu.matmul %7, %0, %cst_9 {dimension_numbers = #tpu.dot_dimension_numbers<[1], [0], [0], [1], [0, 0, 1, 1], [], []>} : vector<8x32xf32>, vector<32x128xf32>, vector<8x128xf32> -> vector<8x128xf32>
    %11 = arith.addf %9, %10 : vector<8x128xf32>
    %12 = vector.extract_strided_slice %11 {offsets = [0, 0], sizes = [8, 32], strides = [1, 1]} : vector<8x128xf32> to vector<8x32xf32>
    %13 = arith.negf %12 : vector<8x32xf32>
    %14 = math.exp %13 : vector<8x32xf32>
    %cst_10 = arith.constant 1.000000e+00 : f32
    %15 = vector.broadcast %cst_10 : f32 to vector<8x32xf32>
    %16 = arith.addf %15, %14 : vector<8x32xf32>
    %17 = arith.divf %15, %16 : vector<8x32xf32>
    %18 = vector.extract_strided_slice %11 {offsets = [0, 32], sizes = [8, 32], strides = [1, 1]} : vector<8x128xf32> to vector<8x32xf32>
    %19 = arith.negf %18 : vector<8x32xf32>
    %20 = math.exp %19 : vector<8x32xf32>
    %cst_11 = arith.constant 1.000000e+00 : f32
    %21 = vector.broadcast %cst_11 : f32 to vector<8x32xf32>
    %22 = arith.addf %21, %20 : vector<8x32xf32>
    %23 = arith.divf %21, %22 : vector<8x32xf32>
    %24 = vector.extract_strided_slice %11 {offsets = [0, 64], sizes = [8, 32], strides = [1, 1]} : vector<8x128xf32> to vector<8x32xf32>
    %25 = math.tanh %24 : vector<8x32xf32>
    %26 = vector.extract_strided_slice %11 {offsets = [0, 96], sizes = [8, 32], strides = [1, 1]} : vector<8x128xf32> to vector<8x32xf32>
    %27 = arith.negf %26 : vector<8x32xf32>
    %28 = math.exp %27 : vector<8x32xf32>
    %cst_12 = arith.constant 1.000000e+00 : f32
    %29 = vector.broadcast %cst_12 : f32 to vector<8x32xf32>
    %30 = arith.addf %29, %28 : vector<8x32xf32>
    %31 = arith.divf %29, %30 : vector<8x32xf32>
    %32 = arith.mulf %23, %8 : vector<8x32xf32>
    %33 = arith.mulf %17, %25 : vector<8x32xf32>
    %34 = arith.addf %32, %33 : vector<8x32xf32>
    %35 = math.tanh %34 : vector<8x32xf32>
    %36 = arith.mulf %31, %35 : vector<8x32xf32>
    %37 = vector.extract_strided_slice %6 {offsets = [8, 0], sizes = [8, 128], strides = [1, 1]} : vector<64x128xf32> to vector<8x128xf32>
    %cst_13 = arith.constant dense<0.000000e+00> : vector<8x128xf32>
    %38 = tpu.matmul %36, %0, %cst_13 {dimension_numbers = #tpu.dot_dimension_numbers<[1], [0], [0], [1], [0, 0, 1, 1], [], []>} : vector<8x32xf32>, vector<32x128xf32>, vector<8x128xf32> -> vector<8x128xf32>
    %39 = arith.addf %37, %38 : vector<8x128xf32>
    %40 = vector.extract_strided_slice %39 {offsets = [0, 0], sizes = [8, 32], strides = [1, 1]} : vector<8x128xf32> to vector<8x32xf32>
    %41 = arith.negf %40 : vector<8x32xf32>
    %42 = math.exp %41 : vector<8x32xf32>
    %cst_14 = arith.constant 1.000000e+00 : f32
    %43 = vector.broadcast %cst_14 : f32 to vector<8x32xf32>
    %44 = arith.addf %43, %42 : vector<8x32xf32>
    %45 = arith.divf %43, %44 : vector<8x32xf32>
    %46 = vector.extract_strided_slice %39 {offsets = [0, 32], sizes = [8, 32], strides = [1, 1]} : vector<8x128xf32> to vector<8x32xf32>
    %47 = arith.negf %46 : vector<8x32xf32>
    %48 = math.exp %47 : vector<8x32xf32>
    %cst_15 = arith.constant 1.000000e+00 : f32
    %49 = vector.broadcast %cst_15 : f32 to vector<8x32xf32>
    %50 = arith.addf %49, %48 : vector<8x32xf32>
    %51 = arith.divf %49, %50 : vector<8x32xf32>
    %52 = vector.extract_strided_slice %39 {offsets = [0, 64], sizes = [8, 32], strides = [1, 1]} : vector<8x128xf32> to vector<8x32xf32>
    %53 = math.tanh %52 : vector<8x32xf32>
    %54 = vector.extract_strided_slice %39 {offsets = [0, 96], sizes = [8, 32], strides = [1, 1]} : vector<8x128xf32> to vector<8x32xf32>
    %55 = arith.negf %54 : vector<8x32xf32>
    %56 = math.exp %55 : vector<8x32xf32>
    %cst_16 = arith.constant 1.000000e+00 : f32
    %57 = vector.broadcast %cst_16 : f32 to vector<8x32xf32>
    %58 = arith.addf %57, %56 : vector<8x32xf32>
    %59 = arith.divf %57, %58 : vector<8x32xf32>
    %60 = arith.mulf %51, %34 : vector<8x32xf32>
    %61 = arith.mulf %45, %53 : vector<8x32xf32>
    %62 = arith.addf %60, %61 : vector<8x32xf32>
    %63 = math.tanh %62 : vector<8x32xf32>
    %64 = arith.mulf %59, %63 : vector<8x32xf32>
    %65 = vector.extract_strided_slice %6 {offsets = [16, 0], sizes = [8, 128], strides = [1, 1]} : vector<64x128xf32> to vector<8x128xf32>
    %cst_17 = arith.constant dense<0.000000e+00> : vector<8x128xf32>
    %66 = tpu.matmul %64, %0, %cst_17 {dimension_numbers = #tpu.dot_dimension_numbers<[1], [0], [0], [1], [0, 0, 1, 1], [], []>} : vector<8x32xf32>, vector<32x128xf32>, vector<8x128xf32> -> vector<8x128xf32>
    %67 = arith.addf %65, %66 : vector<8x128xf32>
    %68 = vector.extract_strided_slice %67 {offsets = [0, 0], sizes = [8, 32], strides = [1, 1]} : vector<8x128xf32> to vector<8x32xf32>
    %69 = arith.negf %68 : vector<8x32xf32>
    %70 = math.exp %69 : vector<8x32xf32>
    %cst_18 = arith.constant 1.000000e+00 : f32
    %71 = vector.broadcast %cst_18 : f32 to vector<8x32xf32>
    %72 = arith.addf %71, %70 : vector<8x32xf32>
    %73 = arith.divf %71, %72 : vector<8x32xf32>
    %74 = vector.extract_strided_slice %67 {offsets = [0, 32], sizes = [8, 32], strides = [1, 1]} : vector<8x128xf32> to vector<8x32xf32>
    %75 = arith.negf %74 : vector<8x32xf32>
    %76 = math.exp %75 : vector<8x32xf32>
    %cst_19 = arith.constant 1.000000e+00 : f32
    %77 = vector.broadcast %cst_19 : f32 to vector<8x32xf32>
    %78 = arith.addf %77, %76 : vector<8x32xf32>
    %79 = arith.divf %77, %78 : vector<8x32xf32>
    %80 = vector.extract_strided_slice %67 {offsets = [0, 64], sizes = [8, 32], strides = [1, 1]} : vector<8x128xf32> to vector<8x32xf32>
    %81 = math.tanh %80 : vector<8x32xf32>
    %82 = vector.extract_strided_slice %67 {offsets = [0, 96], sizes = [8, 32], strides = [1, 1]} : vector<8x128xf32> to vector<8x32xf32>
    %83 = arith.negf %82 : vector<8x32xf32>
    %84 = math.exp %83 : vector<8x32xf32>
    %cst_20 = arith.constant 1.000000e+00 : f32
    %85 = vector.broadcast %cst_20 : f32 to vector<8x32xf32>
    %86 = arith.addf %85, %84 : vector<8x32xf32>
    %87 = arith.divf %85, %86 : vector<8x32xf32>
    %88 = arith.mulf %79, %62 : vector<8x32xf32>
    %89 = arith.mulf %73, %81 : vector<8x32xf32>
    %90 = arith.addf %88, %89 : vector<8x32xf32>
    %91 = math.tanh %90 : vector<8x32xf32>
    %92 = arith.mulf %87, %91 : vector<8x32xf32>
    %93 = vector.extract_strided_slice %6 {offsets = [24, 0], sizes = [8, 128], strides = [1, 1]} : vector<64x128xf32> to vector<8x128xf32>
    %cst_21 = arith.constant dense<0.000000e+00> : vector<8x128xf32>
    %94 = tpu.matmul %92, %0, %cst_21 {dimension_numbers = #tpu.dot_dimension_numbers<[1], [0], [0], [1], [0, 0, 1, 1], [], []>} : vector<8x32xf32>, vector<32x128xf32>, vector<8x128xf32> -> vector<8x128xf32>
    %95 = arith.addf %93, %94 : vector<8x128xf32>
    %96 = vector.extract_strided_slice %95 {offsets = [0, 0], sizes = [8, 32], strides = [1, 1]} : vector<8x128xf32> to vector<8x32xf32>
    %97 = arith.negf %96 : vector<8x32xf32>
    %98 = math.exp %97 : vector<8x32xf32>
    %cst_22 = arith.constant 1.000000e+00 : f32
    %99 = vector.broadcast %cst_22 : f32 to vector<8x32xf32>
    %100 = arith.addf %99, %98 : vector<8x32xf32>
    %101 = arith.divf %99, %100 : vector<8x32xf32>
    %102 = vector.extract_strided_slice %95 {offsets = [0, 32], sizes = [8, 32], strides = [1, 1]} : vector<8x128xf32> to vector<8x32xf32>
    %103 = arith.negf %102 : vector<8x32xf32>
    %104 = math.exp %103 : vector<8x32xf32>
    %cst_23 = arith.constant 1.000000e+00 : f32
    %105 = vector.broadcast %cst_23 : f32 to vector<8x32xf32>
    %106 = arith.addf %105, %104 : vector<8x32xf32>
    %107 = arith.divf %105, %106 : vector<8x32xf32>
    %108 = vector.extract_strided_slice %95 {offsets = [0, 64], sizes = [8, 32], strides = [1, 1]} : vector<8x128xf32> to vector<8x32xf32>
    %109 = math.tanh %108 : vector<8x32xf32>
    %110 = vector.extract_strided_slice %95 {offsets = [0, 96], sizes = [8, 32], strides = [1, 1]} : vector<8x128xf32> to vector<8x32xf32>
    %111 = arith.negf %110 : vector<8x32xf32>
    %112 = math.exp %111 : vector<8x32xf32>
    %cst_24 = arith.constant 1.000000e+00 : f32
    %113 = vector.broadcast %cst_24 : f32 to vector<8x32xf32>
    %114 = arith.addf %113, %112 : vector<8x32xf32>
    %115 = arith.divf %113, %114 : vector<8x32xf32>
    %116 = arith.mulf %107, %90 : vector<8x32xf32>
    %117 = arith.mulf %101, %109 : vector<8x32xf32>
    %118 = arith.addf %116, %117 : vector<8x32xf32>
    %119 = math.tanh %118 : vector<8x32xf32>
    %120 = arith.mulf %115, %119 : vector<8x32xf32>
    %121 = vector.extract_strided_slice %6 {offsets = [32, 0], sizes = [8, 128], strides = [1, 1]} : vector<64x128xf32> to vector<8x128xf32>
    %cst_25 = arith.constant dense<0.000000e+00> : vector<8x128xf32>
    %122 = tpu.matmul %120, %0, %cst_25 {dimension_numbers = #tpu.dot_dimension_numbers<[1], [0], [0], [1], [0, 0, 1, 1], [], []>} : vector<8x32xf32>, vector<32x128xf32>, vector<8x128xf32> -> vector<8x128xf32>
    %123 = arith.addf %121, %122 : vector<8x128xf32>
    %124 = vector.extract_strided_slice %123 {offsets = [0, 0], sizes = [8, 32], strides = [1, 1]} : vector<8x128xf32> to vector<8x32xf32>
    %125 = arith.negf %124 : vector<8x32xf32>
    %126 = math.exp %125 : vector<8x32xf32>
    %cst_26 = arith.constant 1.000000e+00 : f32
    %127 = vector.broadcast %cst_26 : f32 to vector<8x32xf32>
    %128 = arith.addf %127, %126 : vector<8x32xf32>
    %129 = arith.divf %127, %128 : vector<8x32xf32>
    %130 = vector.extract_strided_slice %123 {offsets = [0, 32], sizes = [8, 32], strides = [1, 1]} : vector<8x128xf32> to vector<8x32xf32>
    %131 = arith.negf %130 : vector<8x32xf32>
    %132 = math.exp %131 : vector<8x32xf32>
    %cst_27 = arith.constant 1.000000e+00 : f32
    %133 = vector.broadcast %cst_27 : f32 to vector<8x32xf32>
    %134 = arith.addf %133, %132 : vector<8x32xf32>
    %135 = arith.divf %133, %134 : vector<8x32xf32>
    %136 = vector.extract_strided_slice %123 {offsets = [0, 64], sizes = [8, 32], strides = [1, 1]} : vector<8x128xf32> to vector<8x32xf32>
    %137 = math.tanh %136 : vector<8x32xf32>
    %138 = vector.extract_strided_slice %123 {offsets = [0, 96], sizes = [8, 32], strides = [1, 1]} : vector<8x128xf32> to vector<8x32xf32>
    %139 = arith.negf %138 : vector<8x32xf32>
    %140 = math.exp %139 : vector<8x32xf32>
    %cst_28 = arith.constant 1.000000e+00 : f32
    %141 = vector.broadcast %cst_28 : f32 to vector<8x32xf32>
    %142 = arith.addf %141, %140 : vector<8x32xf32>
    %143 = arith.divf %141, %142 : vector<8x32xf32>
    %144 = arith.mulf %135, %118 : vector<8x32xf32>
    %145 = arith.mulf %129, %137 : vector<8x32xf32>
    %146 = arith.addf %144, %145 : vector<8x32xf32>
    %147 = math.tanh %146 : vector<8x32xf32>
    %148 = arith.mulf %143, %147 : vector<8x32xf32>
    %149 = vector.extract_strided_slice %6 {offsets = [40, 0], sizes = [8, 128], strides = [1, 1]} : vector<64x128xf32> to vector<8x128xf32>
    %cst_29 = arith.constant dense<0.000000e+00> : vector<8x128xf32>
    %150 = tpu.matmul %148, %0, %cst_29 {dimension_numbers = #tpu.dot_dimension_numbers<[1], [0], [0], [1], [0, 0, 1, 1], [], []>} : vector<8x32xf32>, vector<32x128xf32>, vector<8x128xf32> -> vector<8x128xf32>
    %151 = arith.addf %149, %150 : vector<8x128xf32>
    %152 = vector.extract_strided_slice %151 {offsets = [0, 0], sizes = [8, 32], strides = [1, 1]} : vector<8x128xf32> to vector<8x32xf32>
    %153 = arith.negf %152 : vector<8x32xf32>
    %154 = math.exp %153 : vector<8x32xf32>
    %cst_30 = arith.constant 1.000000e+00 : f32
    %155 = vector.broadcast %cst_30 : f32 to vector<8x32xf32>
    %156 = arith.addf %155, %154 : vector<8x32xf32>
    %157 = arith.divf %155, %156 : vector<8x32xf32>
    %158 = vector.extract_strided_slice %151 {offsets = [0, 32], sizes = [8, 32], strides = [1, 1]} : vector<8x128xf32> to vector<8x32xf32>
    %159 = arith.negf %158 : vector<8x32xf32>
    %160 = math.exp %159 : vector<8x32xf32>
    %cst_31 = arith.constant 1.000000e+00 : f32
    %161 = vector.broadcast %cst_31 : f32 to vector<8x32xf32>
    %162 = arith.addf %161, %160 : vector<8x32xf32>
    %163 = arith.divf %161, %162 : vector<8x32xf32>
    %164 = vector.extract_strided_slice %151 {offsets = [0, 64], sizes = [8, 32], strides = [1, 1]} : vector<8x128xf32> to vector<8x32xf32>
    %165 = math.tanh %164 : vector<8x32xf32>
    %166 = vector.extract_strided_slice %151 {offsets = [0, 96], sizes = [8, 32], strides = [1, 1]} : vector<8x128xf32> to vector<8x32xf32>
    %167 = arith.negf %166 : vector<8x32xf32>
    %168 = math.exp %167 : vector<8x32xf32>
    %cst_32 = arith.constant 1.000000e+00 : f32
    %169 = vector.broadcast %cst_32 : f32 to vector<8x32xf32>
    %170 = arith.addf %169, %168 : vector<8x32xf32>
    %171 = arith.divf %169, %170 : vector<8x32xf32>
    %172 = arith.mulf %163, %146 : vector<8x32xf32>
    %173 = arith.mulf %157, %165 : vector<8x32xf32>
    %174 = arith.addf %172, %173 : vector<8x32xf32>
    %175 = math.tanh %174 : vector<8x32xf32>
    %176 = arith.mulf %171, %175 : vector<8x32xf32>
    %177 = vector.extract_strided_slice %6 {offsets = [48, 0], sizes = [8, 128], strides = [1, 1]} : vector<64x128xf32> to vector<8x128xf32>
    %cst_33 = arith.constant dense<0.000000e+00> : vector<8x128xf32>
    %178 = tpu.matmul %176, %0, %cst_33 {dimension_numbers = #tpu.dot_dimension_numbers<[1], [0], [0], [1], [0, 0, 1, 1], [], []>} : vector<8x32xf32>, vector<32x128xf32>, vector<8x128xf32> -> vector<8x128xf32>
    %179 = arith.addf %177, %178 : vector<8x128xf32>
    %180 = vector.extract_strided_slice %179 {offsets = [0, 0], sizes = [8, 32], strides = [1, 1]} : vector<8x128xf32> to vector<8x32xf32>
    %181 = arith.negf %180 : vector<8x32xf32>
    %182 = math.exp %181 : vector<8x32xf32>
    %cst_34 = arith.constant 1.000000e+00 : f32
    %183 = vector.broadcast %cst_34 : f32 to vector<8x32xf32>
    %184 = arith.addf %183, %182 : vector<8x32xf32>
    %185 = arith.divf %183, %184 : vector<8x32xf32>
    %186 = vector.extract_strided_slice %179 {offsets = [0, 32], sizes = [8, 32], strides = [1, 1]} : vector<8x128xf32> to vector<8x32xf32>
    %187 = arith.negf %186 : vector<8x32xf32>
    %188 = math.exp %187 : vector<8x32xf32>
    %cst_35 = arith.constant 1.000000e+00 : f32
    %189 = vector.broadcast %cst_35 : f32 to vector<8x32xf32>
    %190 = arith.addf %189, %188 : vector<8x32xf32>
    %191 = arith.divf %189, %190 : vector<8x32xf32>
    %192 = vector.extract_strided_slice %179 {offsets = [0, 64], sizes = [8, 32], strides = [1, 1]} : vector<8x128xf32> to vector<8x32xf32>
    %193 = math.tanh %192 : vector<8x32xf32>
    %194 = vector.extract_strided_slice %179 {offsets = [0, 96], sizes = [8, 32], strides = [1, 1]} : vector<8x128xf32> to vector<8x32xf32>
    %195 = arith.negf %194 : vector<8x32xf32>
    %196 = math.exp %195 : vector<8x32xf32>
    %cst_36 = arith.constant 1.000000e+00 : f32
    %197 = vector.broadcast %cst_36 : f32 to vector<8x32xf32>
    %198 = arith.addf %197, %196 : vector<8x32xf32>
    %199 = arith.divf %197, %198 : vector<8x32xf32>
    %200 = arith.mulf %191, %174 : vector<8x32xf32>
    %201 = arith.mulf %185, %193 : vector<8x32xf32>
    %202 = arith.addf %200, %201 : vector<8x32xf32>
    %203 = math.tanh %202 : vector<8x32xf32>
    %204 = arith.mulf %199, %203 : vector<8x32xf32>
    %205 = vector.extract_strided_slice %6 {offsets = [56, 0], sizes = [8, 128], strides = [1, 1]} : vector<64x128xf32> to vector<8x128xf32>
    %cst_37 = arith.constant dense<0.000000e+00> : vector<8x128xf32>
    %206 = tpu.matmul %204, %0, %cst_37 {dimension_numbers = #tpu.dot_dimension_numbers<[1], [0], [0], [1], [0, 0, 1, 1], [], []>} : vector<8x32xf32>, vector<32x128xf32>, vector<8x128xf32> -> vector<8x128xf32>
    %207 = arith.addf %205, %206 : vector<8x128xf32>
    %208 = vector.extract_strided_slice %207 {offsets = [0, 0], sizes = [8, 32], strides = [1, 1]} : vector<8x128xf32> to vector<8x32xf32>
    %209 = arith.negf %208 : vector<8x32xf32>
    %210 = math.exp %209 : vector<8x32xf32>
    %cst_38 = arith.constant 1.000000e+00 : f32
    %211 = vector.broadcast %cst_38 : f32 to vector<8x32xf32>
    %212 = arith.addf %211, %210 : vector<8x32xf32>
    %213 = arith.divf %211, %212 : vector<8x32xf32>
    %214 = vector.extract_strided_slice %207 {offsets = [0, 32], sizes = [8, 32], strides = [1, 1]} : vector<8x128xf32> to vector<8x32xf32>
    %215 = arith.negf %214 : vector<8x32xf32>
    %216 = math.exp %215 : vector<8x32xf32>
    %cst_39 = arith.constant 1.000000e+00 : f32
    %217 = vector.broadcast %cst_39 : f32 to vector<8x32xf32>
    %218 = arith.addf %217, %216 : vector<8x32xf32>
    %219 = arith.divf %217, %218 : vector<8x32xf32>
    %220 = vector.extract_strided_slice %207 {offsets = [0, 64], sizes = [8, 32], strides = [1, 1]} : vector<8x128xf32> to vector<8x32xf32>
    %221 = math.tanh %220 : vector<8x32xf32>
    %222 = vector.extract_strided_slice %207 {offsets = [0, 96], sizes = [8, 32], strides = [1, 1]} : vector<8x128xf32> to vector<8x32xf32>
    %223 = arith.negf %222 : vector<8x32xf32>
    %224 = math.exp %223 : vector<8x32xf32>
    %cst_40 = arith.constant 1.000000e+00 : f32
    %225 = vector.broadcast %cst_40 : f32 to vector<8x32xf32>
    %226 = arith.addf %225, %224 : vector<8x32xf32>
    %227 = arith.divf %225, %226 : vector<8x32xf32>
    %228 = arith.mulf %219, %202 : vector<8x32xf32>
    %229 = arith.mulf %213, %221 : vector<8x32xf32>
    %230 = arith.addf %228, %229 : vector<8x32xf32>
    %231 = math.tanh %230 : vector<8x32xf32>
    %232 = arith.mulf %227, %231 : vector<8x32xf32>
    %233 = tpu.concatenate %36, %64, %92, %120, %148, %176, %204, %232 in 0 : vector<8x32xf32>, vector<8x32xf32>, vector<8x32xf32>, vector<8x32xf32>, vector<8x32xf32>, vector<8x32xf32>, vector<8x32xf32>, vector<8x32xf32> -> vector<64x32xf32>
    %c0_41 = arith.constant 0 : index
    %c0_42 = arith.constant 0 : index
    %234 = vector.load %arg10[%c0_41, %c0_42] : memref<64x32xf32, #tpu.memory_space<vmem>>, vector<64x32xf32>
    tpu.vector_store %arg10[%c0_41, %c0_42], %233 {strides = array<i32>} : memref<64x32xf32, #tpu.memory_space<vmem>>, vector<64x32xf32>,
    %c0_43 = arith.constant 0 : index
    %c0_44 = arith.constant 0 : index
    %235 = vector.load %arg5[%c0_43, %c0_44] : memref<32x16xf32, #tpu.memory_space<vmem>>, vector<32x16xf32>
    %cst_45 = arith.constant dense<0.000000e+00> : vector<64x16xf32>
    %236 = tpu.matmul %233, %235, %cst_45 {dimension_numbers = #tpu.dot_dimension_numbers<[1], [0], [0], [1], [0, 0, 1, 1], [], []>} : vector<64x32xf32>, vector<32x16xf32>, vector<64x16xf32> -> vector<64x16xf32>
    %c0_46 = arith.constant 0 : index
    %c0_47 = arith.constant 0 : index
    %237 = vector.load %arg6[%c0_46, %c0_47] : memref<1x16xf32, #tpu.memory_space<vmem>>, vector<1x16xf32>
    %238 = vector.broadcast %237 : vector<1x16xf32> to vector<64x16xf32>
    %239 = arith.addf %236, %238 : vector<64x16xf32>
    %c0_48 = arith.constant 0 : index
    %c0_49 = arith.constant 0 : index
    %240 = vector.load %arg7[%c0_48, %c0_49] : memref<32x16xf32, #tpu.memory_space<vmem>>, vector<32x16xf32>
    %cst_50 = arith.constant dense<0.000000e+00> : vector<64x16xf32>
    %241 = tpu.matmul %233, %240, %cst_50 {dimension_numbers = #tpu.dot_dimension_numbers<[1], [0], [0], [1], [0, 0, 1, 1], [], []>} : vector<64x32xf32>, vector<32x16xf32>, vector<64x16xf32> -> vector<64x16xf32>
    %c0_51 = arith.constant 0 : index
    %c0_52 = arith.constant 0 : index
    %242 = vector.load %arg8[%c0_51, %c0_52] : memref<1x16xf32, #tpu.memory_space<vmem>>, vector<1x16xf32>
    %243 = vector.broadcast %242 : vector<1x16xf32> to vector<64x16xf32>
    %244 = arith.addf %241, %243 : vector<64x16xf32>
    %c0_53 = arith.constant 0 : index
    %c0_54 = arith.constant 0 : index
    %245 = vector.load %arg1[%c0_53, %c0_54] : memref<64x16xf32, #tpu.memory_space<vmem>>, vector<64x16xf32>
    %246 = arith.mulf %245, %244 : vector<64x16xf32>
    %247 = arith.addf %246, %239 : vector<64x16xf32>
    %c0_55 = arith.constant 0 : index
    %c0_56 = arith.constant 0 : index
    %248 = vector.load %arg9[%c0_55, %c0_56] : memref<64x16xf32, #tpu.memory_space<vmem>>, vector<64x16xf32>
    tpu.vector_store %arg9[%c0_55, %c0_56], %247 {strides = array<i32>} : memref<64x16xf32, #tpu.memory_space<vmem>>, vector<64x16xf32>,
    return
  }
}

</mosaic_0001>

<bundles_post_ra>
// kernel: tpu_custom_call.1
= control target key start
LH: loop header
LB: loop body
LE: loop exit
PB: predicated region body
PF: predicated region fallthrough
CT: control target
= control target key end

     0   :  { %vm51_vm0 = vcmask 64512   ;;  %v897_v6 = vmov 0.0   ;;  %s898_s25 = smov 64   ;;  %vm117_vm5 = vcmask 261120   ;;  %s1314_s3 = inlined_call_operand.vmem [shape: f32[32,128], index: 3, kind: input, shape index: {}]   ;;  %s1315_s2 = inlined_call_operand.vmem [shape: f32[8,128], index: 2, kind: input, shape index: {}]   ;;  %s1316_s0 = inlined_call_operand.vmem [shape: f32[64,8], index: 0, kind: input, shape index: {}]   ;;  %s1317_s4 = inlined_call_operand.vmem [shape: f32[1,128], index: 4, kind: input, shape index: {}]   ;;  %s1318_s10 = inlined_call_operand.vmem [shape: f32[64,32], index: 10, kind: output, shape index: {1}]   ;;  %s1319_s5 = inlined_call_operand.vmem [shape: f32[32,16], index: 5, kind: input, shape index: {}]   ;;  %s1320_s6 = inlined_call_operand.vmem [shape: f32[1,16], index: 6, kind: input, shape index: {}]   ;;  %s1321_s7 = inlined_call_operand.vmem [shape: f32[32,16], index: 7, kind: input, shape index: {}]   ;;  %s1322_s8 = inlined_call_operand.vmem [shape: f32[1,16], index: 8, kind: input, shape index: {}]   ;;  %s1323_s1 = inlined_call_operand.vmem [shape: f32[64,16], index: 1, kind: input, shape index: {}]   ;;  %s1324_s9 = inlined_call_operand.vmem [shape: f32[64,16], index: 9, kind: output, shape index: {0}]  }
   0x1   :  { %v958_v0 = vld [vmem:[%s1314_s3 + $0x18] sm:$0xff]  ;;  %v963_v1 = vld [vmem:[%s1314_s3 + $0x10] sm:$0xff]  ;;  %v46_v2 = vld [vmem:[%s1315_s2] sm:$0xff] }
   0x2   :  { %133 = vmatpush.msra.mxu1 %v958_v0  ;;  %91 = vmatpush.msra.mxu0 %v46_v2  ;;  %v38_v3 = vld [vmem:[%s1316_s0] sm:$0xff]  ;;  %v975_v4 = vld [vmem:[%s1314_s3 + $0x8] sm:$0xff]  ;;  %v40_v62 = vld [vmem:[%s1316_s0 + $0x10] sm:$0xff] }
   0x3   :  { %780 = vmatmul.msk.f32.vlgmr.msra.gmra.mxu0 %vm51_vm0, %v38_v3  ;;  %196 = vmatpush.msra.mxu2 %v958_v0  ;;  %v984_v5 = vld [vmem:[%s1314_s3] sm:$0xff]  ;;  %v39_v34 = vld [vmem:[%s1316_s0 + $0x8] sm:$0xff] }
   0x4   :  { %134 = vmatpush.msra.mxu1 %v963_v1  ;;  %259 = vmatpush.msra.mxu3 %v958_v0  ;;  %v1013_v7 = vld [vmem:[%s1317_s4] ss:$0 sm:$0xff]  ;;  %s899_s4 = smov 32  }
   0x5   :  { %197 = vmatpush.msra.mxu2 %v963_v1 }
   0x6   :  { %135 = vmatpush.msra.mxu1 %v975_v4  ;;  %260 = vmatpush.msra.mxu3 %v963_v1 }
   0x7   :  { %198 = vmatpush.msra.mxu2 %v975_v4 }
   0x8   :  { %136 = vmatpush.msra.mxu1 %v984_v5  ;;  %261 = vmatpush.msra.mxu3 %v975_v4 }
   0x9   :  { %137 = vmatmul.f32.vlgmr.msra.gmra.mxu1 %v897_v6  ;;  %199 = vmatpush.msra.mxu2 %v984_v5 }
   0xa   :  { %262 = vmatpush.msra.mxu3 %v984_v5  ;;  %322 = vmatpush.msrb.mxu1 %v958_v0 }
   0xb   :  { %385 = vmatpush.msrb.mxu2 %v958_v0  ;;  %781 = vmatmul.msk.f32.gmra.mxu0 %vm51_vm0, %v39_v34 }
   0xc   :  { %448 = vmatpush.msrb.mxu3 %v958_v0  ;;  %323 = vmatpush.msrb.mxu1 %v963_v1 }
   0xd   :  { %386 = vmatpush.msrb.mxu2 %v963_v1 }
   0xe   :  { %449 = vmatpush.msrb.mxu3 %v963_v1  ;;  %324 = vmatpush.msrb.mxu1 %v975_v4 }
   0xf   :  { %387 = vmatpush.msrb.mxu2 %v975_v4 }
  0x10   :  { %450 = vmatpush.msrb.mxu3 %v975_v4  ;;  %325 = vmatpush.msrb.mxu1 %v984_v5 }
  0x11   :  { %388 = vmatpush.msrb.mxu2 %v984_v5 }
  0x12   :  { %451 = vmatpush.msrb.mxu3 %v984_v5  ;;  %511 = vmatpush.msra.mxu1 %v958_v0 }
  0x13   :  { %782 = vmatmul.msk.f32.gmra.mxu0 %vm51_vm0, %v40_v62 }
  0x14   :  { %512 = vmatpush.msra.mxu1 %v963_v1 }
  0x16   :  { %513 = vmatpush.msra.mxu1 %v975_v4 }
  0x18   :  { %514 = vmatpush.msra.mxu1 %v984_v5 }
  0x80   :  { %v93_v8 = vpop.f32.mrf.mxu0 }
  0x81   :  { %v94_v9 = vadd.f32 %v1013_v7, %v93_v8 }
  0x86   :  { %v138_v10 = vpop.f32.mrf.mxu1 }
  0x87   :  { %v141_v11 = vadd.f32 %v138_v10, %v94_v9 }
  0x88   :  { %v96_v36 = vpop.f32.mrf.mxu0 }
  0x89   :  { %833 = vtanh.f32 %v141_v11  ;;  %v788_v13 = vmul.f32 -1.442695, %v141_v11  ;;  %v97_v37 = vadd.f32 %v1013_v7, %v96_v36 }
  0x8b   :  { %835 = vpow2.f32 %v788_v13 }
  0x8f   :  { %v834_v12 = vpop.eup %833 }
  0x90   :  { %164 = vrot.lane.b32.xlu0 %v834_v12, %s898_s25 }
  0x91   :  { %v836_v14 = vpop.eup %835 }
  0x92   :  { %v145_v15 = vadd.f32 1.0, %v836_v14 }
  0x94   :  { %837 = vrcp.f32 %v145_v15  ;;  %v157_v21 = vand.u32 2147483648, %v145_v15  ;;  %vm151_vm2 = vweird.f32 %v145_v15  ;;  %v155_v22 = vand.u32 2147483647, %v145_v15 }
  0x96   :  { %v158_v24 = vor.u32 1.1754944e-38, %v157_v21  ;;  %vm156_vm4 = vcmp.eq.f32.partialorder %v155_v22, 8.507059e+37 }
  0x9a   :  { %v838_v16 = vpop.eup %837 }
  0x9b   :  { %v147_v17 = vmul.f32 %v838_v16, %v145_v15  ;;  %vm152_vm1 = vweird.f32 %v838_v16 }
  0x9c   :  { %vm153_vm3 = vmor %vm151_vm2, %vm152_vm1 }
  0x9d   :  { %v148_v18 = vsub.f32 1.0, %v147_v17 }
  0x9f   :  { %v149_v19 = vmul.f32 %v838_v16, %v148_v18 }
  0xa1   :  { %v150_v20 = vadd.f32 %v838_v16, %v149_v19 }
  0xa3   :  { %v154_v23 = vsel %vm153_vm3, %v838_v16, %v150_v20 }
  0xa4   :  { %v159_v26 = vsel %vm156_vm4, %v158_v24, %v154_v23 }
  0xa5   :  { %v162_v28 = vmul.f32 0.0, %v159_v26 }
 0x102   :  { %v165_v25 = vpop.permute.xlu0 %164 }
 0x103   :  { %v167_v27 = vmul.f32 %v165_v25, %v159_v26  ;;  %v41_v25 = vld [vmem:[%s1316_s0 + $0x18] sm:$0xff] }
 0x104   :  { %783 = vmatmul.msk.f32.gmra.mxu0 %vm51_vm0, %v41_v25  ;;  %v640_v25 = vld [vmem:[%s1319_s5 + $0x8] sm:$0xff] }
 0x105   :  { %169 = vrot.lane.b32.xlu0 %v167_v27, %s899_s4 }
 0x177   :  { %v170_v29 = vpop.permute.xlu0 %169 }
 0x178   :  { %v172_v30 = vadd.f32 %v170_v29, %v162_v28 }
 0x17a   :  { %839 = vtanh.f32 %v172_v30 }
 0x180   :  { %v840_v31 = vpop.eup %839 }
 0x181   :  { %175 = vrot.lane.b32.xlu1 %v840_v31, %s898_s25 }
 0x1f3   :  { %v176_v32 = vpop.permute.xlu1 %175 }
 0x1f4   :  { %v178_v33 = vmul.f32 %v176_v32, %v159_v26 }
 0x1f6   :  { %180 = vrot.lane.b32.xlu1 %v178_v33, %s899_s4 }
 0x268   :  { %v1024_v35 = vpop.permute.xlu1 %180 }
 0x269   :  { %631 = vst.msk [vmem:[%s1318_s10] sm:$0xff] %vm117_vm5, %v1024_v35  ;;  %789 = vmatmul.msk.f32.vlgmr.msra.gmra.mxu2 %vm117_vm5, %v1024_v35 }
 0x26a   :  { %574 = vmatpush.msra.mxu2 %v958_v0  ;;  %v99_v0 = vpop.f32.mrf.mxu0 }
 0x26c   :  { %575 = vmatpush.msra.mxu2 %v963_v1  ;;  %v100_v1 = vadd.f32 %v1013_v7, %v99_v0 }
 0x26e   :  { %576 = vmatpush.msra.mxu2 %v975_v4 }
 0x270   :  { %577 = vmatpush.msra.mxu2 %v984_v5 }
 0x272   :  { %v102_v29 = vpop.f32.mrf.mxu0 }
 0x2ec   :  { %v201_v38 = vpop.f32.mrf.mxu2 }
 0x2ed   :  { %v204_v39 = vadd.f32 %v201_v38, %v97_v37 }
 0x2ef   :  { %841 = vtanh.f32 %v204_v39  ;;  %v790_v41 = vmul.f32 -1.442695, %v204_v39 }
 0x2f1   :  { %843 = vpow2.f32 %v790_v41 }
 0x2f5   :  { %v842_v40 = vpop.eup %841 }
 0x2f6   :  { %227 = vrot.lane.b32.xlu2 %v842_v40, %s898_s25 }
 0x2f7   :  { %v844_v42 = vpop.eup %843 }
 0x2f8   :  { %v208_v43 = vadd.f32 1.0, %v844_v42 }
 0x2fa   :  { %845 = vrcp.f32 %v208_v43  ;;  %v220_v49 = vand.u32 2147483648, %v208_v43  ;;  %vm214_vm7 = vweird.f32 %v208_v43  ;;  %v218_v50 = vand.u32 2147483647, %v208_v43 }
 0x2fc   :  { %v221_v52 = vor.u32 1.1754944e-38, %v220_v49  ;;  %vm219_vm9 = vcmp.eq.f32.partialorder %v218_v50, 8.507059e+37 }
 0x300   :  { %v846_v44 = vpop.eup %845 }
 0x301   :  { %v210_v45 = vmul.f32 %v846_v44, %v208_v43  ;;  %vm215_vm6 = vweird.f32 %v846_v44 }
 0x302   :  { %vm216_vm8 = vmor %vm214_vm7, %vm215_vm6 }
 0x303   :  { %v211_v46 = vsub.f32 1.0, %v210_v45 }
 0x305   :  { %v212_v47 = vmul.f32 %v846_v44, %v211_v46 }
 0x307   :  { %v213_v48 = vadd.f32 %v846_v44, %v212_v47 }
 0x309   :  { %v217_v51 = vsel %vm216_vm8, %v846_v44, %v213_v48 }
 0x30a   :  { %v222_v54 = vsel %vm219_vm9, %v221_v52, %v217_v51 }
 0x30b   :  { %v225_v56 = vmul.f32 %v222_v54, %v172_v30  ;;  %v103_v30 = vadd.f32 %v1013_v7, %v102_v29 }
 0x350   :  { %v228_v53 = vpop.permute.xlu2 %227 }
 0x351   :  { %v230_v55 = vmul.f32 %v228_v53, %v222_v54 }
 0x353   :  { %232 = vrot.lane.b32.xlu2 %v230_v55, %s899_s4 }
 0x3ad   :  { %v233_v57 = vpop.permute.xlu2 %232 }
 0x3ae   :  { %v235_v58 = vadd.f32 %v233_v57, %v225_v56  ;;  %v42_v56 = vld [vmem:[%s1316_s0 + $0x20] sm:$0xff] }
 0x3af   :  { %784 = vmatmul.msk.f32.gmra.mxu0 %vm51_vm0, %v42_v56 }
 0x3b0   :  { %847 = vtanh.f32 %v235_v58 }
 0x3b6   :  { %v848_v59 = vpop.eup %847 }
 0x3b7   :  { %238 = vrot.lane.b32.xlu0 %v848_v59, %s898_s25 }
 0x429   :  { %v239_v60 = vpop.permute.xlu0 %238 }
 0x42a   :  { %v241_v61 = vmul.f32 %v239_v60, %v222_v54 }
 0x42c   :  { %243 = vrot.lane.b32.xlu1 %v241_v61, %s899_s4 }
 0x49e   :  { %v1046_v63 = vpop.permute.xlu1 %243 }
 0x49f   :  { %632 = vst.msk [vmem:[%s1318_s10 + $0x8] sm:$0xff] %vm117_vm5, %v1046_v63  ;;  %791 = vmatmul.msk.f32.vlgmr.msra.gmra.mxu3 %vm117_vm5, %v1046_v63 }
 0x522   :  { %v264_v2 = vpop.f32.mrf.mxu3 }
 0x523   :  { %v267_v3 = vadd.f32 %v264_v2, %v100_v1 }
 0x525   :  { %849 = vtanh.f32 %v267_v3  ;;  %v792_v5 = vmul.f32 -1.442695, %v267_v3 }
 0x527   :  { %851 = vpow2.f32 %v792_v5 }
 0x52b   :  { %v850_v4 = vpop.eup %849 }
 0x52c   :  { %290 = vrot.lane.b32.xlu2 %v850_v4, %s898_s25 }
 0x52d   :  { %v852_v6 = vpop.eup %851 }
 0x52e   :  { %v271_v8 = vadd.f32 1.0, %v852_v6 }
 0x530   :  { %853 = vrcp.f32 %v271_v8  ;;  %v283_v14 = vand.u32 2147483648, %v271_v8  ;;  %vm277_vm11 = vweird.f32 %v271_v8  ;;  %v281_v15 = vand.u32 2147483647, %v271_v8 }
 0x532   :  { %v284_v17 = vor.u32 1.1754944e-38, %v283_v14  ;;  %vm282_vm13 = vcmp.eq.f32.partialorder %v281_v15, 8.507059e+37 }
 0x536   :  { %v854_v9 = vpop.eup %853 }
 0x537   :  { %v273_v10 = vmul.f32 %v854_v9, %v271_v8  ;;  %vm278_vm10 = vweird.f32 %v854_v9 }
 0x538   :  { %vm279_vm12 = vmor %vm277_vm11, %vm278_vm10 }
 0x539   :  { %v274_v11 = vsub.f32 1.0, %v273_v10 }
 0x53b   :  { %v275_v12 = vmul.f32 %v854_v9, %v274_v11 }
 0x53d   :  { %v276_v13 = vadd.f32 %v854_v9, %v275_v12 }
 0x53f   :  { %v280_v16 = vsel %vm279_vm12, %v854_v9, %v276_v13  ;;  %vm763_vm12 = vcmask 130048  }
 0x540   :  { %v285_v19 = vsel %vm282_vm13, %v284_v17, %v280_v16 }
 0x541   :  { %v288_v21 = vmul.f32 %v285_v19, %v235_v58  ;;  %v105_v58 = vpop.f32.mrf.mxu0 }
 0x542   :  { %v106_v59 = vadd.f32 %v1013_v7, %v105_v58  ;;  %v1142_v58 = vld [vmem:[%s1321_s7 + $0x18] sm:$0xff] }
 0x586   :  { %v291_v18 = vpop.permute.xlu2 %290 }
 0x587   :  { %v293_v20 = vmul.f32 %v291_v18, %v285_v19 }
 0x589   :  { %295 = vrot.lane.b32.xlu0 %v293_v20, %s899_s4 }
 0x5fb   :  { %v296_v22 = vpop.permute.xlu0 %295 }
 0x5fc   :  { %v298_v23 = vadd.f32 %v296_v22, %v288_v21  ;;  %v642_v22 = vld [vmem:[%s1319_s5 + $0x18] sm:$0xff] }
 0x5fd   :  { %819 = vmatpush.msra.mxu3 %v642_v22 }
 0x5fe   :  { %855 = vtanh.f32 %v298_v23 }
 0x604   :  { %v856_v24 = vpop.eup %855 }
 0x605   :  { %301 = vrot.lane.b32.xlu1 %v856_v24, %s898_s25  ;;  %v43_v24 = vld [vmem:[%s1316_s0 + $0x28] sm:$0xff] }
 0x606   :  { %785 = vmatmul.msk.f32.gmra.mxu0 %vm51_vm0, %v43_v24  ;;  %v743_v24 = vld [vmem:[%s1323_s1 + $0x20] sm:$0xff] }
 0x677   :  { %v302_v26 = vpop.permute.xlu1 %301 }
 0x678   :  { %v304_v27 = vmul.f32 %v302_v26, %v285_v19  ;;  %v639_v26 = vld [vmem:[%s1319_s5] sm:$0xff] }
 0x67a   :  { %306 = vrot.lane.b32.xlu2 %v304_v27, %s899_s4 }
 0x683   :  { %v108_v29 = vpop.f32.mrf.mxu0 }
 0x6d4   :  { %v1064_v28 = vpop.permute.xlu2 %306 }
 0x6d5   :  { %633 = vst.msk [vmem:[%s1318_s10 + $0x10] sm:$0xff] %vm117_vm5, %v1064_v28  ;;  %793 = vmatmul.msk.f32.vlgmr.msrb.gmra.mxu1 %vm117_vm5, %v1064_v28 }
 0x6d6   :  { %710 = vmatpush.msrb.mxu1 %v1142_v58 }
 0x752   :  { %v327_v31 = vpop.f32.mrf.mxu1 }
 0x753   :  { %v330_v32 = vadd.f32 %v327_v31, %v103_v30  ;;  %v109_v30 = vadd.f32 %v1013_v7, %v108_v29 }
 0x755   :  { %857 = vtanh.f32 %v330_v32  ;;  %v794_v34 = vmul.f32 -1.442695, %v330_v32 }
 0x757   :  { %859 = vpow2.f32 %v794_v34 }
 0x75b   :  { %v858_v33 = vpop.eup %857 }
 0x75c   :  { %353 = vrot.lane.b32.xlu0 %v858_v33, %s898_s25 }
 0x75d   :  { %v860_v36 = vpop.eup %859 }
 0x75e   :  { %v334_v37 = vadd.f32 1.0, %v860_v36 }
 0x760   :  { %861 = vrcp.f32 %v334_v37  ;;  %v346_v43 = vand.u32 2147483648, %v334_v37  ;;  %vm340_vm15 = vweird.f32 %v334_v37  ;;  %v344_v44 = vand.u32 2147483647, %v334_v37 }
 0x762   :  { %v347_v46 = vor.u32 1.1754944e-38, %v346_v43  ;;  %vm345_vm2 = vcmp.eq.f32.partialorder %v344_v44, 8.507059e+37 }
 0x766   :  { %v862_v38 = vpop.eup %861 }
 0x767   :  { %v336_v39 = vmul.f32 %v862_v38, %v334_v37  ;;  %vm341_vm14 = vweird.f32 %v862_v38 }
 0x768   :  { %vm342_vm1 = vmor %vm340_vm15, %vm341_vm14 }
 0x769   :  { %v337_v40 = vsub.f32 1.0, %v336_v39 }
 0x76b   :  { %v338_v41 = vmul.f32 %v862_v38, %v337_v40 }
 0x76d   :  { %v339_v42 = vadd.f32 %v862_v38, %v338_v41 }
 0x76f   :  { %v343_v45 = vsel %vm342_vm1, %v862_v38, %v339_v42 }
 0x770   :  { %v348_v48 = vsel %vm345_vm2, %v347_v46, %v343_v45 }
 0x771   :  { %v351_v50 = vmul.f32 %v348_v48, %v298_v23  ;;  %v641_v23 = vld [vmem:[%s1319_s5 + $0x10] sm:$0xff] }
 0x772   :  { %820 = vmatpush.msra.mxu3 %v641_v23 }
 0x774   :  { %821 = vmatpush.msra.mxu3 %v640_v25 }
 0x776   :  { %822 = vmatpush.msra.mxu3 %v639_v26 }
 0x7ce   :  { %v354_v47 = vpop.permute.xlu0 %353 }
 0x7cf   :  { %v356_v49 = vmul.f32 %v354_v47, %v348_v48 }
 0x7d1   :  { %358 = vrot.lane.b32.xlu1 %v356_v49, %s899_s4 }
 0x843   :  { %v359_v51 = vpop.permute.xlu1 %358 }
 0x844   :  { %v361_v52 = vadd.f32 %v359_v51, %v351_v50 }
 0x846   :  { %863 = vtanh.f32 %v361_v52 }
 0x84c   :  { %v864_v53 = vpop.eup %863 }
 0x84d   :  { %364 = vrot.lane.b32.xlu2 %v864_v53, %s898_s25 }
 0x8a7   :  { %v365_v54 = vpop.permute.xlu2 %364 }
 0x8a8   :  { %v367_v55 = vmul.f32 %v365_v54, %v348_v48  ;;  %v44_v54 = vld [vmem:[%s1316_s0 + $0x30] sm:$0xff] }
 0x8a9   :  { %786 = vmatmul.msk.f32.gmra.mxu0 %vm51_vm0, %v44_v54 }
 0x8aa   :  { %369 = vrot.lane.b32.xlu0 %v367_v55, %s899_s4 }
 0x91c   :  { %v1082_v57 = vpop.permute.xlu0 %369 }
 0x91d   :  { %634 = vst.msk [vmem:[%s1318_s10 + $0x18] sm:$0xff] %vm117_vm5, %v1082_v57  ;;  %795 = vmatmul.msk.f32.vlgmr.msrb.gmra.mxu2 %vm117_vm5, %v1082_v57 }
 0x91e   :  { %661 = vmatpush.msrb.mxu2 %v642_v22 }
 0x920   :  { %662 = vmatpush.msrb.mxu2 %v641_v23 }
 0x922   :  { %663 = vmatpush.msrb.mxu2 %v640_v25 }
 0x924   :  { %664 = vmatpush.msrb.mxu2 %v639_v26 }
 0x9a0   :  { %v390_v60 = vpop.f32.mrf.mxu2 }
 0x9a1   :  { %v393_v61 = vadd.f32 %v390_v60, %v106_v59  ;;  %v1147_v59 = vld [vmem:[%s1321_s7 + $0x10] sm:$0xff]  ;;  %v1153_v60 = vld [vmem:[%s1321_s7 + $0x8] sm:$0xff] }
 0x9a2   :  { %711 = vmatpush.msrb.mxu1 %v1147_v59 }
 0x9a3   :  { %865 = vtanh.f32 %v393_v61  ;;  %v796_v0 = vmul.f32 -1.442695, %v393_v61  ;;  %v1159_v61 = vld [vmem:[%s1321_s7] sm:$0xff] }
 0x9a4   :  { %712 = vmatpush.msrb.mxu1 %v1153_v60 }
 0x9a5   :  { %867 = vpow2.f32 %v796_v0  ;;  %v111_v0 = vpop.f32.mrf.mxu0 }
 0x9a6   :  { %713 = vmatpush.msrb.mxu1 %v1159_v61 }
 0x9a9   :  { %v866_v62 = vpop.eup %865 }
 0x9aa   :  { %416 = vrot.lane.b32.xlu1 %v866_v62, %s898_s25 }
 0x9ab   :  { %v868_v1 = vpop.eup %867 }
 0x9ac   :  { %v397_v2 = vadd.f32 1.0, %v868_v1  ;;  %v112_v1 = vadd.f32 %v1013_v7, %v111_v0 }
 0x9ae   :  { %869 = vrcp.f32 %v397_v2  ;;  %v409_v9 = vand.u32 2147483648, %v397_v2  ;;  %vm403_vm4 = vweird.f32 %v397_v2  ;;  %v407_v10 = vand.u32 2147483647, %v397_v2 }
 0x9b0   :  { %v410_v12 = vor.u32 1.1754944e-38, %v409_v9  ;;  %vm408_vm7 = vcmp.eq.f32.partialorder %v407_v10, 8.507059e+37  ;;  %v741_v10 = vld [vmem:[%s1323_s1 + $0x10] sm:$0xff] }
 0x9b4   :  { %v870_v3 = vpop.eup %869 }
 0x9b5   :  { %v399_v4 = vmul.f32 %v870_v3, %v397_v2  ;;  %vm404_vm3 = vweird.f32 %v870_v3 }
 0x9b6   :  { %vm405_vm6 = vmor %vm403_vm4, %vm404_vm3 }
 0x9b7   :  { %v400_v5 = vsub.f32 1.0, %v399_v4 }
 0x9b9   :  { %v401_v6 = vmul.f32 %v870_v3, %v400_v5 }
 0x9bb   :  { %v402_v8 = vadd.f32 %v870_v3, %v401_v6 }
 0x9bd   :  { %v406_v11 = vsel %vm405_vm6, %v870_v3, %v402_v8  ;;  %v1198_v8 = vld [vmem:[%s1322_s8] ss:$0 sm:$0xff] }
 0x9be   :  { %v411_v14 = vsel %vm408_vm7, %v410_v12, %v406_v11 }
 0x9bf   :  { %v414_v16 = vmul.f32 %v411_v14, %v361_v52 }
 0xa1c   :  { %v417_v13 = vpop.permute.xlu1 %416 }
 0xa1d   :  { %v419_v15 = vmul.f32 %v417_v13, %v411_v14 }
 0xa1f   :  { %421 = vrot.lane.b32.xlu2 %v419_v15, %s899_s4 }
 0xa79   :  { %v422_v17 = vpop.permute.xlu2 %421 }
 0xa7a   :  { %v424_v18 = vadd.f32 %v422_v17, %v414_v16  ;;  %v742_v17 = vld [vmem:[%s1323_s1 + $0x18] sm:$0xff] }
 0xa7c   :  { %871 = vtanh.f32 %v424_v18 }
 0xa82   :  { %v872_v19 = vpop.eup %871 }
 0xa83   :  { %427 = vrot.lane.b32.xlu0 %v872_v19, %s898_s25 }
 0xaf5   :  { %v428_v20 = vpop.permute.xlu0 %427 }
 0xaf6   :  { %v430_v21 = vmul.f32 %v428_v20, %v411_v14 }
 0xaf8   :  { %432 = vrot.lane.b32.xlu1 %v430_v21, %s899_s4 }
 0xb6a   :  { %v1112_v27 = vpop.permute.xlu1 %432 }
 0xb6b   :  { %635 = vst.msk [vmem:[%s1318_s10 + $0x20] sm:$0xff] %vm117_vm5, %v1112_v27  ;;  %797 = vmatmul.msk.f32.vlgmr.msrb.gmra.mxu3 %vm117_vm5, %v1112_v27 }
 0xb73   :  { %805 = vmatmul.msk.f32.vlgmr.msra.gmra.mxu3 %vm117_vm5, %v1064_v28 }
 0xb7b   :  { %806 = vmatmul.msk.f32.gmra.mxu3 %vm117_vm5, %v1082_v57 }
 0xb83   :  { %807 = vmatmul.msk.f32.gmra.mxu3 %vm117_vm5, %v1112_v27 }
 0xbee   :  { %v453_v31 = vpop.f32.mrf.mxu3 }
 0xbef   :  { %v456_v32 = vadd.f32 %v453_v31, %v109_v30 }
 0xbf1   :  { %873 = vtanh.f32 %v456_v32  ;;  %v798_v34 = vmul.f32 -1.442695, %v456_v32 }
 0xbf3   :  { %875 = vpow2.f32 %v798_v34 }
 0xbf7   :  { %v874_v33 = vpop.eup %873 }
 0xbf8   :  { %479 = vrot.lane.b32.xlu2 %v874_v33, %s898_s25 }
 0xbf9   :  { %v876_v36 = vpop.eup %875 }
 0xbfa   :  { %v460_v37 = vadd.f32 1.0, %v876_v36 }
 0xbfc   :  { %877 = vrcp.f32 %v460_v37  ;;  %v472_v43 = vand.u32 2147483648, %v460_v37  ;;  %vm466_vm9 = vweird.f32 %v460_v37  ;;  %v470_v44 = vand.u32 2147483647, %v460_v37 }
 0xbfe   :  { %v473_v46 = vor.u32 1.1754944e-38, %v472_v43  ;;  %vm471_vm11 = vcmp.eq.f32.partialorder %v470_v44, 8.507059e+37 }
 0xc02   :  { %v878_v38 = vpop.eup %877 }
 0xc03   :  { %v462_v39 = vmul.f32 %v878_v38, %v460_v37  ;;  %vm467_vm8 = vweird.f32 %v878_v38 }
 0xc04   :  { %vm468_vm10 = vmor %vm466_vm9, %vm467_vm8 }
 0xc05   :  { %v463_v40 = vsub.f32 1.0, %v462_v39 }
 0xc07   :  { %v464_v41 = vmul.f32 %v878_v38, %v463_v40 }
 0xc09   :  { %v465_v42 = vadd.f32 %v878_v38, %v464_v41 }
 0xc0b   :  { %v469_v45 = vsel %vm468_vm10, %v878_v38, %v465_v42 }
 0xc0c   :  { %v474_v48 = vsel %vm471_vm11, %v473_v46, %v469_v45 }
 0xc0d   :  { %v477_v50 = vmul.f32 %v474_v48, %v424_v18 }
 0xc52   :  { %v480_v47 = vpop.permute.xlu2 %479 }
 0xc53   :  { %v482_v49 = vmul.f32 %v480_v47, %v474_v48 }
 0xc55   :  { %484 = vrot.lane.b32.xlu0 %v482_v49, %s899_s4 }
 0xcc7   :  { %v485_v51 = vpop.permute.xlu0 %484 }
 0xcc8   :  { %v1130_v52 = vadd.f32 %v485_v51, %v477_v50 }
 0xcca   :  { %879 = vtanh.f32 %v1130_v52 }
 0xcd0   :  { %v880_v53 = vpop.eup %879 }
 0xcd1   :  { %490 = vrot.lane.b32.xlu1 %v880_v53, %s898_s25  ;;  %v45_v53 = vld [vmem:[%s1316_s0 + $0x38] sm:$0xff] }
 0xcd2   :  { %787 = vmatmul.msk.f32.gmra.mxu0 %vm51_vm0, %v45_v53 }
 0xd43   :  { %v491_v55 = vpop.permute.xlu1 %490 }
 0xd44   :  { %v493_v56 = vmul.f32 %v491_v55, %v474_v48 }
 0xd46   :  { %495 = vrot.lane.b32.xlu2 %v493_v56, %s899_s4 }
 0xda0   :  { %v1163_v62 = vpop.permute.xlu2 %495 }
 0xda1   :  { %636 = vst.msk [vmem:[%s1318_s10 + $0x28] sm:$0xff] %vm117_vm5, %v1163_v62  ;;  %799 = vmatmul.msk.f32.vlgmr.msra.gmra.mxu1 %vm117_vm5, %v1163_v62  ;;  %808 = vmatmul.msk.f32.gmra.mxu3 %vm117_vm5, %v1163_v62 }
 0xda9   :  { %811 = vmatmul.msk.f32.vlgmr.msrb.gmra.mxu1 %vm117_vm5, %v1024_v35 }
 0xdb1   :  { %812 = vmatmul.msk.f32.gmra.mxu1 %vm117_vm5, %v1046_v63 }
 0xdb9   :  { %813 = vmatmul.msk.f32.gmra.mxu1 %vm117_vm5, %v1064_v28  ;;  %v672_v28 = vpop.f32.mrf.mxu3 }
 0xdc1   :  { %814 = vmatmul.msk.f32.gmra.mxu1 %vm117_vm5, %v1082_v57  ;;  %v1193_v57 = vld [vmem:[%s1320_s6] ss:$0 sm:$0xff]  ;;  %v675_v15 = vpop.f32.mrf.mxu3 }
 0xdc2   :  { %v673_v12 = vadd.f32 %v1193_v57, %v672_v28  ;;  %v676_v19 = vadd.f32 %v1193_v57, %v675_v15 }
 0xdc9   :  { %815 = vmatmul.msk.f32.gmra.mxu1 %vm117_vm5, %v1112_v27  ;;  %v678_v22 = vpop.f32.mrf.mxu3 }
 0xdca   :  { %v679_v26 = vadd.f32 %v1193_v57, %v678_v22 }
 0xe1e   :  { %v516_v2 = vpop.f32.mrf.mxu1 }
 0xe1f   :  { %v519_v3 = vadd.f32 %v516_v2, %v112_v1  ;;  %v740_v1 = vld [vmem:[%s1323_s1 + $0x8] sm:$0xff] }
 0xe21   :  { %881 = vtanh.f32 %v519_v3  ;;  %v800_v30 = vmul.f32 -1.442695, %v519_v3 }
 0xe23   :  { %883 = vpow2.f32 %v800_v30 }
 0xe26   :  { %v1185_v4 = vpop.f32.mrf.mxu1 }
 0xe27   :  { %v882_v5 = vpop.eup %881 }
 0xe28   :  { %542 = vrot.lane.b32.xlu0 %v882_v5, %s898_s25 }
 0xe29   :  { %v884_v31 = vpop.eup %883 }
 0xe2a   :  { %v523_v32 = vadd.f32 1.0, %v884_v31 }
 0xe2c   :  { %885 = vrcp.f32 %v523_v32  ;;  %v535_v39 = vand.u32 2147483648, %v523_v32  ;;  %vm529_vm14 = vweird.f32 %v523_v32  ;;  %v533_v40 = vand.u32 2147483647, %v523_v32 }
 0xe2e   :  { %v1188_v6 = vpop.f32.mrf.mxu1  ;;  %v536_v42 = vor.u32 1.1754944e-38, %v535_v39  ;;  %vm534_vm1 = vcmp.eq.f32.partialorder %v533_v40, 8.507059e+37 }
 0xe32   :  { %v886_v33 = vpop.eup %885 }
 0xe33   :  { %v525_v34 = vmul.f32 %v886_v33, %v523_v32  ;;  %vm530_vm13 = vweird.f32 %v886_v33 }
 0xe34   :  { %vm531_vm15 = vmor %vm529_vm14, %vm530_vm13 }
 0xe35   :  { %v526_v36 = vsub.f32 1.0, %v525_v34 }
 0xe36   :  { %v721_v9 = vpop.f32.mrf.mxu1 }
 0xe37   :  { %v722_v11 = vadd.f32 %v1198_v8, %v721_v9  ;;  %v527_v37 = vmul.f32 %v886_v33, %v526_v36  ;;  %v744_v9 = vld [vmem:[%s1323_s1 + $0x28] sm:$0xff] }
 0xe39   :  { %v749_v13 = vmul.f32 %v741_v10, %v722_v11  ;;  %v528_v38 = vadd.f32 %v886_v33, %v527_v37 }
 0xe3b   :  { %v757_v14 = vadd.f32 %v749_v13, %v673_v12  ;;  %v532_v41 = vsel %vm531_vm15, %v886_v33, %v528_v38 }
 0xe3c   :  { %v537_v44 = vsel %vm534_vm1, %v536_v42, %v532_v41 }
 0xe3d   :  { %766 = vst.msk [vmem:[%s1324_s9 + $0x10] sm:$0xff] %vm763_vm12, %v757_v14  ;;  %v540_v46 = vmul.f32 %v537_v44, %v1130_v52  ;;  %v114_v52 = vpop.f32.mrf.mxu0 }
 0xe3e   :  { %v724_v16 = vpop.f32.mrf.mxu1  ;;  %v115_v55 = vadd.f32 %v1013_v7, %v114_v52  ;;  %v719_v7 = vadd.f32 %v1198_v8, %v1188_v6  ;;  %v681_v6 = vpop.f32.mrf.mxu3 }
 0xe3f   :  { %v725_v18 = vadd.f32 %v1198_v8, %v724_v16  ;;  %v682_v11 = vadd.f32 %v1193_v57, %v681_v6  ;;  %v745_v16 = vld [vmem:[%s1323_s1 + $0x30] sm:$0xff] }
 0xe40   :  { %v748_v3 = vmul.f32 %v740_v1, %v719_v7 }
 0xe41   :  { %v750_v20 = vmul.f32 %v742_v17, %v725_v18 }
 0xe43   :  { %v758_v21 = vadd.f32 %v750_v20, %v676_v19 }
 0xe45   :  { %767 = vst.msk [vmem:[%s1324_s9 + $0x18] sm:$0xff] %vm763_vm12, %v758_v21 }
 0xe46   :  { %v727_v23 = vpop.f32.mrf.mxu1 }
 0xe47   :  { %v728_v25 = vadd.f32 %v1198_v8, %v727_v23 }
 0xe49   :  { %v751_v27 = vmul.f32 %v743_v24, %v728_v25 }
 0xe4b   :  { %v759_v29 = vadd.f32 %v751_v27, %v679_v26 }
 0xe4d   :  { %768 = vst.msk [vmem:[%s1324_s9 + $0x20] sm:$0xff] %vm763_vm12, %v759_v29 }
 0xe9a   :  { %v543_v43 = vpop.permute.xlu0 %542 }
 0xe9b   :  { %v545_v45 = vmul.f32 %v543_v43, %v537_v44 }
 0xe9d   :  { %547 = vrot.lane.b32.xlu1 %v545_v45, %s899_s4 }
 0xf0f   :  { %v548_v47 = vpop.permute.xlu1 %547 }
 0xf10   :  { %v1229_v48 = vadd.f32 %v548_v47, %v540_v46  ;;  %v746_v47 = vld [vmem:[%s1323_s1 + $0x38] sm:$0xff] }
 0xf12   :  { %887 = vtanh.f32 %v1229_v48 }
 0xf18   :  { %v888_v49 = vpop.eup %887 }
 0xf19   :  { %553 = vrot.lane.b32.xlu2 %v888_v49, %s898_s25 }
 0xf73   :  { %v554_v50 = vpop.permute.xlu2 %553 }
 0xf74   :  { %v556_v51 = vmul.f32 %v554_v50, %v537_v44 }
 0xf76   :  { %558 = vrot.lane.b32.xlu0 %v556_v51, %s899_s4 }
 0xfe8   :  { %v559_v54 = vpop.permute.xlu0 %558 }
 0xfe9   :  { %637 = vst.msk [vmem:[%s1318_s10 + $0x30] sm:$0xff] %vm117_vm5, %v559_v54  ;;  %801 = vmatmul.msk.f32.vlgmr.msra.gmra.mxu2 %vm117_vm5, %v559_v54  ;;  %809 = vmatmul.msk.f32.gmra.mxu3 %vm117_vm5, %v559_v54 }
 0xfea   :  { %823 = vmatpush.msra.mxu2 %v1142_v58 }
 0xfec   :  { %824 = vmatpush.msra.mxu2 %v1147_v59  ;;  %v716_v59 = vadd.f32 %v1198_v8, %v1185_v4 }
 0xfee   :  { %825 = vmatpush.msra.mxu2 %v1153_v60 }
 0xff0   :  { %826 = vmatpush.msra.mxu2 %v1159_v61 }
 0xff1   :  { %803 = vmatmul.msk.f32.vlgmr.msrb.gmra.mxu2 %vm117_vm5, %v1024_v35  ;;  %v739_v35 = vld [vmem:[%s1323_s1] sm:$0xff] }
 0xff2   :  { %v747_v61 = vmul.f32 %v739_v35, %v716_v59 }
 0xff9   :  { %804 = vmatmul.msk.f32.gmra.mxu2 %vm117_vm5, %v1046_v63 }
0x1001   :  { %816 = vmatmul.msk.f32.vlgmr.msra.gmra.mxu2 %vm117_vm5, %v1163_v62 }
0x1009   :  { %817 = vmatmul.msk.f32.gmra.mxu2 %vm117_vm5, %v559_v54 }
0x106c   :  { %v579_v56 = vpop.f32.mrf.mxu2  ;;  %v684_v14 = vpop.f32.mrf.mxu3 }
0x106d   :  { %v582_v58 = vadd.f32 %v579_v56, %v115_v55  ;;  %v685_v18 = vadd.f32 %v1193_v57, %v684_v14 }
0x106f   :  { %889 = vtanh.f32 %v582_v58  ;;  %v802_v21 = vmul.f32 -1.442695, %v582_v58 }
0x1071   :  { %891 = vpow2.f32 %v802_v21 }
0x1074   :  { %v666_v60 = vpop.f32.mrf.mxu2 }
0x1075   :  { %v890_v63 = vpop.eup %889  ;;  %v667_v62 = vadd.f32 %v1193_v57, %v666_v60 }
0x1076   :  { %605 = vrot.lane.b32.xlu1 %v890_v63, %s898_s25 }
0x1077   :  { %v755_v0 = vadd.f32 %v747_v61, %v667_v62  ;;  %v892_v22 = vpop.eup %891 }
0x1078   :  { %v586_v23 = vadd.f32 1.0, %v892_v22 }
0x1079   :  { %764 = vst.msk [vmem:[%s1324_s9] sm:$0xff] %vm763_vm12, %v755_v0 }
0x107a   :  { %893 = vrcp.f32 %v586_v23  ;;  %v598_v30 = vand.u32 2147483648, %v586_v23  ;;  %vm592_vm2 = vweird.f32 %v586_v23  ;;  %v596_v31 = vand.u32 2147483647, %v586_v23 }
0x107c   :  { %v669_v2 = vpop.f32.mrf.mxu2  ;;  %v599_v33 = vor.u32 1.1754944e-38, %v598_v30  ;;  %vm597_vm4 = vcmp.eq.f32.partialorder %v596_v31, 8.507059e+37 }
0x107d   :  { %v670_v4 = vadd.f32 %v1193_v57, %v669_v2 }
0x107f   :  { %v756_v5 = vadd.f32 %v748_v3, %v670_v4 }
0x1080   :  { %v894_v24 = vpop.eup %893 }
0x1081   :  { %765 = vst.msk [vmem:[%s1324_s9 + $0x8] sm:$0xff] %vm763_vm12, %v756_v5  ;;  %v588_v25 = vmul.f32 %v894_v24, %v586_v23  ;;  %vm593_vm0 = vweird.f32 %v894_v24 }
0x1082   :  { %vm594_vm3 = vmor %vm592_vm2, %vm593_vm0 }
0x1083   :  { %v589_v26 = vsub.f32 1.0, %v588_v25 }
0x1084   :  { %v730_v28 = vpop.f32.mrf.mxu2 }
0x1085   :  { %v731_v10 = vadd.f32 %v1198_v8, %v730_v28  ;;  %v590_v27 = vmul.f32 %v894_v24, %v589_v26 }
0x1087   :  { %v752_v12 = vmul.f32 %v744_v9, %v731_v10  ;;  %v591_v29 = vadd.f32 %v894_v24, %v590_v27 }
0x1089   :  { %v760_v13 = vadd.f32 %v752_v12, %v682_v11  ;;  %v595_v32 = vsel %vm594_vm3, %v894_v24, %v591_v29 }
0x108a   :  { %v600_v36 = vsel %vm597_vm4, %v599_v33, %v595_v32 }
0x108b   :  { %769 = vst.msk [vmem:[%s1324_s9 + $0x28] sm:$0xff] %vm763_vm12, %v760_v13  ;;  %v603_v38 = vmul.f32 %v600_v36, %v1229_v48 }
0x108c   :  { %v733_v15 = vpop.f32.mrf.mxu2 }
0x108d   :  { %v734_v17 = vadd.f32 %v1198_v8, %v733_v15 }
0x108f   :  { %v753_v19 = vmul.f32 %v745_v16, %v734_v17 }
0x1091   :  { %v761_v20 = vadd.f32 %v753_v19, %v685_v18 }
0x1093   :  { %770 = vst.msk [vmem:[%s1324_s9 + $0x30] sm:$0xff] %vm763_vm12, %v761_v20 }
0x10e8   :  { %v606_v34 = vpop.permute.xlu1 %605 }
0x10e9   :  { %v608_v37 = vmul.f32 %v606_v34, %v600_v36 }
0x10eb   :  { %610 = vrot.lane.b32.xlu2 %v608_v37, %s899_s4 }
0x1145   :  { %v611_v39 = vpop.permute.xlu2 %610 }
0x1146   :  { %v613_v40 = vadd.f32 %v611_v39, %v603_v38 }
0x1148   :  { %895 = vtanh.f32 %v613_v40 }
0x114e   :  { %v896_v41 = vpop.eup %895 }
0x114f   :  { %616 = vrot.lane.b32.xlu0 %v896_v41, %s898_s25 }
0x11c1   :  { %v617_v42 = vpop.permute.xlu0 %616 }
0x11c2   :  { %v619_v43 = vmul.f32 %v617_v42, %v600_v36 }
0x11c4   :  { %621 = vrot.lane.b32.xlu1 %v619_v43, %s899_s4 }
0x1236   :  { %v622_v44 = vpop.permute.xlu1 %621 }
0x1237   :  { %638 = vst.msk [vmem:[%s1318_s10 + $0x38] sm:$0xff] %vm117_vm5, %v622_v44  ;;  %810 = vmatmul.msk.f32.gmra.mxu3 %vm117_vm5, %v622_v44  ;;  %818 = vmatmul.msk.f32.gmra.mxu2 %vm117_vm5, %v622_v44 }
0x12ba   :  { %v687_v45 = vpop.f32.mrf.mxu3  ;;  %v736_v46 = vpop.f32.mrf.mxu2 }
0x12bb   :  { %v737_v48 = vadd.f32 %v1198_v8, %v736_v46  ;;  %v688_v49 = vadd.f32 %v1193_v57, %v687_v45 }
0x12bd   :  { %v754_v50 = vmul.f32 %v746_v47, %v737_v48 }
0x12bf   :  { %v762_v51 = vadd.f32 %v754_v50, %v688_v49 }
0x12c1   :  { %771 = vst.msk [vmem:[%s1324_s9 + $0x38] sm:$0xff] %vm763_vm12, %v762_v51 }

</bundles_post_ra>
